<compile_context>
chip_gen: v5e
topology: v5e:2x2
jax: 0.10.0
libtpu: 0.0.40
codegen_flags: <defaults>
</compile_context>

<pallas_src>
import jax
import jax.numpy as jnp
from jax.experimental import pallas as pl
from jax.experimental.pallas import tpu as pltpu


def union_block_kernel(cf_ref, x_ref, hint_ref, noise_ref, out_ref):
    """One lane-tile of the fused CFG + DDIM update.

    cf_ref : (2C, 128) f32 resident coefficient tile
             cols [0, 2C)   : fused x-path matrix    (CFG mix * (I+wc)@wu * B)
             cols [2C, 4C)  : fused hint-path matrix (CFG mix * wh@wu * B)
             col  4C        : fused bias column      (B * CFG-mixed bias)
             col  4C + 1    : A = alphas_prev / alphas (replicated)
    x/hint/noise/out : (2C, TP) tiles, batch folded into the sublane axis.
    """
    cf = cf_ref[...]
    c2 = cf.shape[0]

    x = x_ref[...].astype(jnp.float32)
    h = hint_ref[...].astype(jnp.float32)
    z = noise_ref[...].astype(jnp.float32)

    # B * e_t, replicated across the cond/uncond halves (rows r and r+C of the
    # coefficient tile are identical).  One dense contraction per stream.
    et = (jnp.dot(cf[:, 0:c2], x, preferred_element_type=jnp.float32)
          + jnp.dot(cf[:, c2:2 * c2], h, preferred_element_type=jnp.float32))

    a_col = cf[:, 2 * c2 + 1:2 * c2 + 2]          # (2C, 1)  A
    b_col = cf[:, 2 * c2:2 * c2 + 1]              # (2C, 1)  B * bias_mix
    out_ref[...] = (a_col * x + et + b_col + z).astype(out_ref.dtype)


def _pick_tile_p(p, rows, itemsize):
    """Largest lane tile that (a) divides P, (b) is a multiple of 128, (c) keeps
    the double-buffered footprint of the 4 streamed arrays under ~8 MiB, and
    (d) prefers an even grid length (so the 'parallel' axis can split across
    both v7x TensorCores)."""
    if p % 128 != 0:
        return p                                   # awkward sizes: full-extent block
    budget = 8 * 1024 * 1024
    max_tile = max(128, budget // (4 * 2 * rows * itemsize))
    limit = min(max_tile, p // 2) if p >= 256 else p
    best_any = None
    best_even = None
    cand = 128
    while cand <= limit:
        if p % cand == 0:
            best_any = cand
            if (p // cand) % 2 == 0:
                best_even = cand
        cand += 128
    if best_even is not None:
        return best_even
    if best_any is not None:
        return best_any
    return p


def union_block(x_nchw, hint_nchw, t, context, alphas, alphas_prev,
                sqrt_one_minus_alphas, noise_nchw, temp_di, uncond_scale,
                wc, wh, wu, wctx, *, tile_p=None):
    n, c, hh, ww = x_nchw.shape
    assert n == 2, "UnionBlock assumes a stacked cond/uncond batch (b = n // 2 = 1)"
    p = hh * ww
    c2 = 2 * c
    dt = x_nchw.dtype
    assert hint_nchw.dtype == dt and noise_nchw.dtype == dt
    f32 = jnp.float32

    # Free views (contiguous NCHW): fold the batch dim into the sublane axis.
    x_f = x_nchw.reshape(c2, p)
    h_f = hint_nchw.reshape(c2, p)
    z_f = noise_nchw.reshape(c2, p)

    # ---------- host-side fusion (tiny: O(C^2 + N*S*D)) ----------
    # glue: deterministic tiny timestep embedding + context projection
    temb = jnp.sin(t.astype(f32)[:, None]
                   * (jnp.arange(c, dtype=f32)[None, :] + 1.0) * 0.1)        # (N, C)
    bias = jnp.mean(context.astype(f32), axis=1) @ wctx.astype(f32) + temb   # (N, C)

    u = jnp.asarray(uncond_scale, f32)
    A = jnp.asarray(alphas_prev, f32) / jnp.asarray(alphas, f32)
    B = (jnp.asarray(temp_di, f32)
         - jnp.asarray(alphas_prev, f32) * jnp.asarray(sqrt_one_minus_alphas, f32)
           / jnp.asarray(alphas, f32))

    eye = jnp.eye(c, dtype=f32)
    w1b = B * ((eye + wc.astype(f32)) @ wu.astype(f32))   # (C_in, C_out)  x path
    w2b = B * (wh.astype(f32) @ wu.astype(f32))           # (C_in, C_out)  hint path
    bias_mix = bias[1] + u * (bias[0] - bias[1])          # (C,)  CFG-mixed bias

    # Kernel contraction matrices (output-channel major), CFG mix folded in:
    #   B*e_t[r] = sum_j cfx[r, j] * x_f[j] + cfh[r, j] * hint_f[j] + B*bias_mix[r % C]
    cfx = jnp.concatenate([u * w1b.T, (1.0 - u) * w1b.T], axis=1)    # (C, 2C)
    cfh = jnp.concatenate([u * w2b.T, (1.0 - u) * w2b.T], axis=1)    # (C, 2C)
    bias_col = (B * bias_mix)[:, None]                                # (C, 1)
    a_col = A * jnp.ones((c, 1), f32)                                 # (C, 1)
    half = jnp.concatenate([cfx, cfh, bias_col, a_col], axis=1)       # (C, 4C + 2)
    cf = jnp.concatenate([half, half], axis=0)                        # (2C, 4C + 2)
    cf = jnp.pad(cf, ((0, 0), (0, (-cf.shape[1]) % 128)))             # lane-aligned

    # ---------- tiling ----------
    itemsize = jnp.dtype(dt).itemsize
    if tile_p is None:
        tile_p = _pick_tile_p(p, c2, itemsize)
    assert p % tile_p == 0
    grid = (p // tile_p,)

    # HBM-bound: 4 streamed arrays (x, hint, noise, out).
    ce = pl.CostEstimate(
        flops=4 * c2 * c2 * p + 4 * c2 * p,
        transcendentals=0,
        bytes_accessed=4 * c2 * p * itemsize + cf.size * 4,
    )

    out_f = pl.pallas_call(
        union_block_kernel,
        out_shape=jax.ShapeDtypeStruct((c2, p), dt),
        grid_spec=pl.GridSpec(
            grid=grid,
            in_specs=[
                pl.BlockSpec((c2, cf.shape[1]), lambda i: (0, 0)),   # coefficients (resident)
                pl.BlockSpec((c2, tile_p), lambda i: (0, i)),        # x
                pl.BlockSpec((c2, tile_p), lambda i: (0, i)),        # hint
                pl.BlockSpec((c2, tile_p), lambda i: (0, i)),        # noise
            ],
            out_specs=pl.BlockSpec((c2, tile_p), lambda i: (0, i)),
        ),
        compiler_params=pltpu.CompilerParams(
            dimension_semantics=("parallel",),
            vmem_limit_bytes=32 * 1024 * 1024,
        ),
        cost_estimate=ce,
        input_output_aliases={3: 0},        # donate the noise buffer as the output
    )(cf, x_f, h_f, z_f)

    return out_f.reshape(n, c, hh, ww)


def union_block_ref(x_nchw, hint_nchw, t, context, alphas, alphas_prev,
                    sqrt_one_minus_alphas, noise_nchw, temp_di, uncond_scale,
                    wc, wh, wu, wctx):
    """Pure-JAX reference mirroring the ORIGINAL (unfused) math + stand-in models."""
    n, c, h, w = x_nchw.shape
    p = h * w
    to_npc = lambda a: a.reshape(n, c, p).transpose(0, 2, 1).astype(jnp.float32)
    x, hint, noise = to_npc(x_nchw), to_npc(hint_nchw), to_npc(noise_nchw)
    temb = jnp.sin(t.astype(jnp.float32)[:, None] *
                   (jnp.arange(c, dtype=jnp.float32)[None, :] + 1.0) * 0.1)
    control = x @ wc + hint @ wh
    bias = jnp.mean(context.astype(jnp.float32), axis=1) @ wctx + temb
    b_latent = (x + control) @ wu + bias[:, None, :]
    b = n // 2
    e_t = b_latent[b:] + uncond_scale * (b_latent[:b] - b_latent[b:])
    pred_x0 = (x - sqrt_one_minus_alphas * e_t) / alphas
    dir_xt = temp_di * e_t
    out = alphas_prev * pred_x0 + dir_xt + noise
    return out.transpose(0, 2, 1).reshape(n, c, h, w)


if __name__ == "__main__":
    key = jax.random.PRNGKey(0)
    k = jax.random.split(key, 8)

    N, C, H, W = 2, 4, 16, 16      # stacked cond/uncond batch -> b = 1
    S, D = 8, 32                   # context: seq=8, hidden=32

    x       = jax.random.normal(k[0], (N, C, H, W), dtype=jnp.float32)
    hint    = jax.random.normal(k[1], (N, C, H, W), dtype=jnp.float32)
    noise   = jax.random.normal(k[2], (N, C, H, W), dtype=jnp.float32)
    context = jax.random.normal(k[3], (N, S, D), dtype=jnp.float32)
    t       = jnp.array([37, 37], dtype=jnp.int32)

    # deterministic synthetic weights for the stand-in sub-models
    wc   = 0.05 * jax.random.normal(k[4], (C, C), dtype=jnp.float32)
    wh   = 0.05 * jax.random.normal(k[5], (C, C), dtype=jnp.float32)
    wu   = 0.05 * jax.random.normal(k[6], (C, C), dtype=jnp.float32)
    wctx = 0.05 * jax.random.normal(k[7], (D, C), dtype=jnp.float32)

    # DDIM step scalars (assumed already sqrt'd where applicable, as in the spec)
    alphas, alphas_prev = 0.7, 0.8
    sqrt_one_minus_alphas = 0.5477
    temp_di, uncond_scale = 0.31, 7.5

    out = union_block(x, hint, t, context, alphas, alphas_prev,
                      sqrt_one_minus_alphas, noise, temp_di, uncond_scale,
                      wc, wh, wu, wctx)
    out = jax.block_until_ready(out)

    ref = union_block_ref(x, hint, t, context, alphas, alphas_prev,
                          sqrt_one_minus_alphas, noise, temp_di, uncond_scale,
                          wc, wh, wu, wctx)
    assert out.shape == (N, C, H, W)
    assert jnp.allclose(out, ref, atol=1e-4, rtol=1e-4), "mismatch vs JAX reference"
    print("KERNEL_OK")
</pallas_src>

<mosaic_0001>
module attributes {stable_mosaic.version = 11 : i64} {
  func.func @union_block_kernel(%arg0: i32, %arg1: memref<8x128xf32, #tpu.memory_space<vmem>>, %arg2: memref<8x128xf32, #tpu.memory_space<vmem>>, %arg3: memref<8x128xf32, #tpu.memory_space<vmem>>, %arg4: memref<8x128xf32, #tpu.memory_space<vmem>>, %arg5: memref<8x128xf32, #tpu.memory_space<vmem>>) attributes {dimension_semantics = [#tpu.dimension_semantics<parallel>], iteration_bounds = array<i64: 2>, scalar_prefetch = 0 : i64, scratch_operands = 0 : i64, tpu.core_type = #tpu.core_type<tc>, window_params = [{pipeline_mode = #tpu.pipeline_mode<synchronous>, transform_indices = @transform_0, window_bounds = array<i64: 8, 128>}, {transform_indices = @transform_1, window_bounds = array<i64: 8, 128>}, {transform_indices = @transform_2, window_bounds = array<i64: 8, 128>}, {transform_indices = @transform_3, window_bounds = array<i64: 8, 128>}, {transform_indices = @transform_4, window_bounds = array<i64: 8, 128>}]} {
    %c0 = arith.constant 0 : index
    %c0_0 = arith.constant 0 : index
    %0 = vector.load %arg1[%c0, %c0_0] : memref<8x128xf32, #tpu.memory_space<vmem>>, vector<8x128xf32>
    %c0_1 = arith.constant 0 : index
    %c0_2 = arith.constant 0 : index
    %1 = vector.load %arg2[%c0_1, %c0_2] : memref<8x128xf32, #tpu.memory_space<vmem>>, vector<8x128xf32>
    %c0_3 = arith.constant 0 : index
    %c0_4 = arith.constant 0 : index
    %2 = vector.load %arg3[%c0_3, %c0_4] : memref<8x128xf32, #tpu.memory_space<vmem>>, vector<8x128xf32>
    %c0_5 = arith.constant 0 : index
    %c0_6 = arith.constant 0 : index
    %3 = vector.load %arg4[%c0_5, %c0_6] : memref<8x128xf32, #tpu.memory_space<vmem>>, vector<8x128xf32>
    %4 = vector.extract_strided_slice %0 {offsets = [0, 0], sizes = [8, 8], strides = [1, 1]} : vector<8x128xf32> to vector<8x8xf32>
    %cst = arith.constant dense<0.000000e+00> : vector<8x128xf32>
    %5 = tpu.matmul %4, %1, %cst {dimension_numbers = #tpu.dot_dimension_numbers<[1], [0], [0], [1], [0, 0, 1, 1], [], []>} : vector<8x8xf32>, vector<8x128xf32>, vector<8x128xf32> -> vector<8x128xf32>
    %6 = vector.extract_strided_slice %0 {offsets = [0, 8], sizes = [8, 8], strides = [1, 1]} : vector<8x128xf32> to vector<8x8xf32>
    %cst_7 = arith.constant dense<0.000000e+00> : vector<8x128xf32>
    %7 = tpu.matmul %6, %2, %cst_7 {dimension_numbers = #tpu.dot_dimension_numbers<[1], [0], [0], [1], [0, 0, 1, 1], [], []>} : vector<8x8xf32>, vector<8x128xf32>, vector<8x128xf32> -> vector<8x128xf32>
    %8 = arith.addf %5, %7 : vector<8x128xf32>
    %9 = vector.extract_strided_slice %0 {offsets = [0, 17], sizes = [8, 1], strides = [1, 1]} : vector<8x128xf32> to vector<8x1xf32>
    %10 = vector.extract_strided_slice %0 {offsets = [0, 16], sizes = [8, 1], strides = [1, 1]} : vector<8x128xf32> to vector<8x1xf32>
    %11 = vector.broadcast %9 : vector<8x1xf32> to vector<8x128xf32>
    %12 = arith.mulf %11, %1 : vector<8x128xf32>
    %13 = arith.addf %12, %8 : vector<8x128xf32>
    %14 = vector.broadcast %10 : vector<8x1xf32> to vector<8x128xf32>
    %15 = arith.addf %13, %14 : vector<8x128xf32>
    %16 = arith.addf %15, %3 : vector<8x128xf32>
    %c0_8 = arith.constant 0 : index
    %c0_9 = arith.constant 0 : index
    %17 = vector.load %arg5[%c0_8, %c0_9] : memref<8x128xf32, #tpu.memory_space<vmem>>, vector<8x128xf32>
    tpu.vector_store %arg5[%c0_8, %c0_9], %16 {strides = array<i32>} : memref<8x128xf32, #tpu.memory_space<vmem>>, vector<8x128xf32>,
    return
  }
  func.func @transform_0(%arg0: i32) -> (i32, i32) {
    %c0_i32 = arith.constant 0 : i32
    %c0_i32_0 = arith.constant 0 : i32
    %c0_i32_1 = arith.constant 0 : i32
    return %c0_i32, %c0_i32_0 : i32, i32
  }
  func.func @transform_1(%arg0: i32) -> (i32, i32) {
    %c0_i32 = arith.constant 0 : i32
    %c0_i32_0 = arith.constant 0 : i32
    return %c0_i32, %arg0 : i32, i32
  }
  func.func @transform_2(%arg0: i32) -> (i32, i32) {
    %c0_i32 = arith.constant 0 : i32
    %c0_i32_0 = arith.constant 0 : i32
    return %c0_i32, %arg0 : i32, i32
  }
  func.func @transform_3(%arg0: i32) -> (i32, i32) {
    %c0_i32 = arith.constant 0 : i32
    %c0_i32_0 = arith.constant 0 : i32
    return %c0_i32, %arg0 : i32, i32
  }
  func.func @transform_4(%arg0: i32) -> (i32, i32) {
    %c0_i32 = arith.constant 0 : i32
    %c0_i32_0 = arith.constant 0 : i32
    return %c0_i32, %arg0 : i32, i32
  }
}

</mosaic_0001>

<bundles_post_ra>
// kernel: tpu_custom_call.1
= control target key start
LH: loop header
LB: loop body
LE: loop exit
PB: predicated region body
PF: predicated region fallthrough
CT: control target
= control target key end

     0   :  { %9 = vsyncpa [#allocation3], 0  ;;  %s846_s0 = inlined_call_operand.hbm [shape: f32[8,128], index: 0, kind: input, shape index: {}]   ;;  %s847_s1 = inlined_call_operand.vmem [shape: f32[8,256], index: 1, kind: input, shape index: {}]   ;;  %s848_s2 = inlined_call_operand.vmem [shape: f32[8,256], index: 2, kind: input, shape index: {}]   ;;  %s849_s3 = inlined_call_operand.hbm [shape: f32[8,256], index: 3, kind: input, shape index: {}, may-alias: {3,4}]   ;;  %s850_s4 = inlined_call_operand.hbm [shape: f32[8,256], index: 4, kind: output, shape index: {}, may-alias: {3,4}]  }
   0x1   :  { %10 = vsyncpa [#allocation6], 0 }
   0x2   :  { %12 = vsyncpa [#allocation6 + $0x1], 0 }
   0x3   :  { %13 = vsyncpa [#allocation4], 0 }
   0x4   :  { %15 = vsyncpa [#allocation4 + $0x1], 0  ;;  %s693_s15 = smov 0   ;;  %s695_s16 = smov 0  }
   0x5   :  { %s697_s17 = smov 0   ;;  %s699_s18 = smov 0  }
   0x6 LB: > { %s714_s19 = sadd.s32 4294967295, %s662_s18   ;;  %s451_s20 = sadd.s32 4294967294, %s662_s18   ;;  %s662_s18 = sphi %s699_s18, %s860_s18   ;;  %s658_s17 = sphi %s697_s17, %s859_s17   ;;  %s654_s16 = sphi %s695_s16, %s858_s16   ;;  %s650_s15 = sphi %s693_s15, %s857_s15  }
   0x7   : > { %p114_p0 = scmp.ne.s32.totalorder %s654_s16, %s650_s15  ;;  %p115_p1 = scmp.eq.s32.totalorder %s714_s19, 0 }
   0x8   : > { %p138_p2 = scmp.eq.s32.totalorder %s714_s19, 1  ;;  %p144_p3 = scmp.eq.s32.totalorder %s451_s20, 1 }
   0x9   : > { %p723_p4 = por %p115_p1, %p114_p0  ;;  %p452_p5 = scmp.ge.s32.totalorder %s662_s18, 1 }
   0xa   : > { %p728_p6 = por %p144_p3, %p114_p0  ;;  %p151_p7 = scmp.lt.s32.totalorder %s662_s18, 3 }
   0xb   : > { %s163_s25 = sshll.u32 %s846_s0, 4  ;;  %s664_s27 = smov [#allocation2]   ;;  %s164_s25 = int_to_ptr.hbm [resolvable:$true] %s163_s25 }
   0xc   : > { %p736_p8 = pnand %p452_p5, %p151_p7  ;;  %s165_s28 = sshll.u32 %s664_s27, 4  ;;  %s166_s28 = int_to_ptr.vmem [resolvable:$true] %s165_s28 }
   0xd   : > { %s746_s29 = sadd.s32 1, %s662_s18   ;;  %s101_s30 = sadd.s32 1, %s658_s17 }
   0xe   : > { %p477_p10 = pneg %p736_p8  ;;  %s98_s5 = ssub.s32 %s662_s18, %s746_s29 }
   0xf   : > { %p99_p12 = scmp.eq.s32.totalorder %s98_s5, 0  ;;  %p108_p13 = scmp.ne.s32.totalorder %s658_s17, %s654_s16 }
  0x10   : > { %p478_p11 = pnand %p477_p10, %p115_p1  ;;  %p109_p0 = scmp.eq.s32.totalorder %s662_s18, 0 }
  0x11   : > { %s755_s6 = scalar_select %p99_p12, %s658_s17, %s101_s30  }
  0x12   : > { %480 = dma.hbm_to_vmem [thread:$0]  (!%p478_p11), %s164_s25, 128, %s166_s28, [#allocation3]  }
  0x13   : > { %p759_p3 = por %p138_p2, %p108_p13  ;;  %p490_p5 = scmp.lt.s32.totalorder %s662_s18, 2 }
  0x14   : > { %s190_s8 = sand.u32 1, %s658_s17   ;;  %s456_s9 = sshll.u32 %s662_s18, 3 }
  0x15   : > { %p110_p7 = por %p109_p0, %p108_p13  ;;  %s455_s10 = sshll.u32 %s190_s8, 3 }
  0x16   : > { %s198_s13 = scalar_lea.hbm %s849_s3, %s456_s9  ;;  %s194_s20 = scalar_lea.vmem [#allocation5], %s455_s10 }
  0x17   : > { %s200_s14 = sshll.u32 %s198_s13, 4  ;;  %s202_s23 = sshll.u32 %s194_s20, 4  ;;  %s201_s14 = int_to_ptr.hbm [resolvable:$true] %s200_s14  ;;  %s203_s23 = int_to_ptr.vmem [resolvable:$true] %s202_s23 }
  0x18   : > { %p769_p10 = pnand %p490_p5, %p110_p7  ;;  %s191_s25 = scalar_lea.sflag [#allocation6], %s190_s8 }
  0x19   : > { %s562_s27 = sshra.s32 %s201_s14, 4  ;;  %s569_s9 = scalar_lea.hbm %s849_s3, 16  ;;  %s563_s27 = int_to_ptr.hbm [resolvable:$true] %s562_s27 }
  0x1a   : > { %s564_s28 = scalar_lea.hbm %s563_s27, 8  ;;  %p566_p11 = pneg %p769_p10 }
  0x1b   : > { %p565_p2 = scmp.ne.s32.totalorder %s563_s27, %s564_s28  ;;  %p570_p0 = scmp.lt.s32.totalorder %s563_s27, %s849_s3 }
  0x1c   : > { %p571_p5 = scmp.lt.s32.totalorder %s569_s9, %s564_s28 }
  0x1d   : > { %p567_p12 = pnand %p566_p11, %p565_p2 }
  0x1e   : > { %p572_p7 = por %p571_p5, %p570_p0 }
  0x1f   : > { %p568_p13 = pneg %p567_p12 }
  0x21   : > { %p573_p9 = pnand %p572_p7, %p568_p13 }
  0x23   : > { %576 = shalt.err (!%p573_p9)
}
  0x24   : > { %484 = dma.hbm_to_vmem [thread:$0]  (!%p769_p10), %s201_s14, 128, %s203_s23, %s191_s25  }
  0x25   : > { %211 = sbr.rel (%p736_p8) target bundleno = 300 (0x12c), region = 36 }
  0x2a   : > { %637 = dma.done.wait (%p115_p1), [#allocation3], 128  }
  0x2b   : > { %639 = vsyncadd (%p115_p1), [#allocation3], 4294967168  ;;  %s790_s8 = sand.u32 1, %s654_s16  }
  0x2c   : > { %s459_s12 = sshll.u32 %s790_s8, 3  ;;  %s219_s13 = scalar_lea.sflag [#allocation6], %s790_s8 }
  0x2d   : > { %s796_s14 = scalar_lea.vmem [#allocation5], %s459_s12 }
  0x2e   : > { %641 = dma.done.wait (%p723_p4), %s219_s13, 128  }
  0x2f   : > { %643 = vsyncadd (%p723_p4), %s219_s13, 4294967168  ;;  %p256_p1 = scmp.lt.s32.totalorder %s714_s19, 1  ;;  %v264_v0 = vld [vmem:[#allocation2] sm:$0xff]  ;;  %s665_s5 = smov 120   ;;  %vm271_vm0 = vcmask 64512   ;;  %v666_v3 = vmov 17  }
  0x30   : > { %269 = vrot.lane.b32.xlu0 %v264_v0, %s665_s5  ;;  %v667_v4 = vmov 16   ;;  %s466_s21 = sshll.u32 %s714_s19, 3  ;;  %v267_v13 = vld [vmem:[%s796_s14] sm:$0xff]  ;;  %s255_s13 = scalar_lea.vmem [#allocation7], %s459_s12 }
  0x31   : > { %s257_s26 = scalar_select %p256_p1, %s714_s19, 1  ;;  %529 = vset.pattern.permute.xlu0 %v666_v3  ;;  %530 = vset.pattern.permute.xlu1 %v667_v4 }
  0x32   : > { %323 = vperm.xlu1 %530, %v264_v0   ;;  %s340_s11 = scalar_lea.hbm %s850_s4, %s466_s21  ;;  %s330_s19 = scalar_lea.sflag [#allocation4], %s790_s8 }
  0x33   : > { %s461_s20 = sshll.u32 %s257_s26, 3  ;;  %s342_s26 = sshll.u32 %s255_s13, 4  ;;  %s343_s26 = int_to_ptr.vmem [resolvable:$true] %s342_s26 }
  0x34   : > { %s263_s25 = scalar_lea.vmem %s848_s2, %s461_s20  ;;  %s259_s30 = scalar_lea.vmem %s847_s1, %s461_s20 }
  0x35   : > { %v266_v1 = vld [vmem:[%s263_s25] sm:$0xff]  ;;  %s344_s20 = sshll.u32 %s340_s11, 4  ;;  %s612_s14 = scalar_lea.hbm %s850_s4, 16  ;;  %s345_s20 = int_to_ptr.hbm [resolvable:$true] %s344_s20 }
  0x36   : > { %v265_v2 = vld [vmem:[%s259_s30] sm:$0xff]  ;;  %289 = vmatpush.msra.mxu0 %v266_v1  ;;  %s606_s23 = sshra.s32 %s345_s20, 4  ;;  %s607_s23 = int_to_ptr.hbm [resolvable:$true] %s606_s23 }
  0x37   : > { %311 = vmatpush.msra.mxu1 %v265_v2  ;;  %s608_s24 = scalar_lea.hbm %s607_s23, 8  ;;  %p613_p10 = scmp.lt.s32.totalorder %s607_s23, %s850_s4 }
  0x38   : > { %464 = vmatmul.msk.f32.vlgmr.msra.gmra.mxu1 %vm271_vm0, %v264_v0  ;;  %317 = vperm.xlu0 %529, %v264_v0   ;;  %p609_p4 = scmp.ne.s32.totalorder %s607_s23, %s608_s24  ;;  %p614_p2 = scmp.lt.s32.totalorder %s612_s14, %s608_s24 }
  0x3a   : > { %p610_p8 = pnand %p609_p4, %p759_p3  ;;  %p615_p11 = por %p614_p2, %p613_p10 }
  0x3c   : > { %p611_p9 = pneg %p610_p8 }
  0x3e   : > { %p616_p12 = pnand %p615_p11, %p611_p9 }
  0x40   : > { %531 = vset.pattern.permute.xlu0 %v667_v4 }
  0xa2   : > { %v270_v5 = vpop.permute.xlu0 %269 }
  0xa3   : > { %463 = vmatmul.msk.f32.vlgmr.msra.gmra.mxu0 %vm271_vm0, %v270_v5 }
  0xa4   : > { %v324_v11 = vpop.permute.xlu1 %323 }
  0xaa   : > { %v318_v6 = vpop.permute.xlu0 %317 }
  0xab   : > { %v320_v8 = vmul.f32 %v318_v6, %v265_v2 }
  0xb5   : > { %v313_v7 = vpop.f32.mrf.mxu1 }
 0x120   : > { %v291_v9 = vpop.f32.mrf.mxu0 }
 0x121   : > { %v314_v10 = vadd.f32 %v313_v7, %v291_v9 }
 0x123   : > { %v321_v12 = vadd.f32 %v320_v8, %v314_v10 }
 0x125   : > { %v326_v14 = vadd.f32 %v324_v11, %v321_v12 }
 0x127   : > { %v327_v15 = vadd.f32 %v326_v14, %v267_v13 }
 0x129   : > { %328 = vst [vmem:[%s255_s13] sm:$0xff] %v327_v15 }
 0x12a   : > { %619 = shalt.err (!%p616_p12)
}
 0x12b   : > { %475 = dma.vmem_to_hbm [thread:$0]  (%p759_p3), %s343_s26, 128, %s345_s20, %s330_s19  }
 0x12c PF: > { %s356_s8 = sand.u32 1, %s650_s15   ;;  %p856_p13 = scmp.ge.s32.totalorder %s662_s18, 2 }
 0x12d   : > { %s357_s30 = scalar_lea.sflag [#allocation4], %s356_s8 }
 0x12e   : > { %p486_p0 = pnand %p856_p13, %p728_p6 }
 0x130   : > { %p487_p5 = pneg %p486_p0 }
 0x132   : > { %645 = dma.done.wait (%p487_p5), %s357_s30, 128  }
 0x133   : > { %647 = vsyncadd (%p487_p5), %s357_s30, 4294967168  ;;  %p18_p7 = scmp.ge.s32.totalorder %s746_s29, 4   ;;  %s857_s15 = smov %s654_s16 }
 0x134   : > { %s858_s16 = smov %s658_s17  ;;  %s859_s17 = smov %s755_s6 }
 0x135   : > { %s860_s18 = smov %s746_s29  ;;  %20 = sbr.rel (!%p18_p7) target bundleno = 6 (0x6), region = 92 }
 0x13a   :  { %363 = vsyncpa [#allocation3], 1 }
 0x13b   :  { %365 = vsyncpa [#allocation3 + $0x1], 1 }
 0x13c   :  { %366 = vsyncpa [#allocation6], 1 }
 0x13d   :  { %368 = vsyncpa [#allocation6 + $0x1], 1 }
 0x13e   :  { %369 = vsyncpa [#allocation4], 1 }
 0x13f   :  { %371 = vsyncpa [#allocation4 + $0x1], 1 }

</bundles_post_ra>
